<compile_context>
chip_gen: v7x
topology: tpu7x:2x2x1
jax: 0.10.0
libtpu: 0.0.40
codegen_flags: <defaults>
</compile_context>

<pallas_src>
import functools

import jax
import jax.numpy as jnp
from jax.experimental import pallas as pl
from jax.experimental.pallas import tpu as pltpu

EPS = 1e-5  # nn.InstanceNorm2d default eps (affine=False, track_running_stats=False)
BIN_SIZES = (1, 2, 3, 6)


def _vmem_limit_bytes():
    """Scoped-VMEM limit with headroom below physical (64 MiB/TC v7x, 128 MiB v5e/v6e)."""
    try:
        cap = int(pltpu.get_tpu_info().vmem_capacity_bytes)
    except Exception:
        cap = 64 * 1024 * 1024
    return int(min(max(cap - 16 * 1024 * 1024, 32 * 1024 * 1024), 112 * 1024 * 1024))


VMEM_LIMIT = _vmem_limit_bytes()


def _pick_tile(total, target, quantum=8):
    """Largest divisor of `total` that is <= target and a multiple of `quantum`
    (falls back to `total`, which is always a legal full-extent block)."""
    if total <= target:
        return total
    for t in range(target, 0, -1):
        if total % t == 0 and t % quantum == 0:
            return t
    return total


# ---------------------------------------------------------------------------
# Kernel 1: fused 3x3 conv (single-pass rows, resident weight, bf16) +
#           streaming InstanceNorm statistics
# ---------------------------------------------------------------------------
def _conv3x3_stats_kernel(x_ref, w_ref, y_ref, s1_ref, s2_ref, acc_ref):
    # x_ref : (W+2, Cin)     one zero-padded input row (padded row k = i*TH + r), bf16
    # w_ref : (3, 3, Cin, Cs) full 3x3 weight [dy, dx, cin, cout], resident, bf16
    # y_ref : (TH, W, Cs)    un-normalized conv output tile (bf16, resident out)
    # s1/s2 : (1, Cs)        per-tile sum / sum-of-squares (f32 streaming IN stats)
    # acc   : (TH, W, Cs)    f32 VMEM accumulator scratch
    th, w_cols, cs = acc_ref.shape
    r = pl.program_id(2)

    xv = x_ref[...]                      # (W+2, Cin) bf16
    # Pre-slice the three dx windows once; shared by every dy tap of this row,
    # and the MXU results then land already column-aligned (no post-shift).
    x0 = xv[0:w_cols, :]
    x1 = xv[1:w_cols + 1, :]
    x2 = xv[2:w_cols + 2, :]

    def contrib(dy):
        c = jnp.dot(x0, w_ref[dy, 0], preferred_element_type=jnp.float32)
        c = c + jnp.dot(x1, w_ref[dy, 1], preferred_element_type=jnp.float32)
        c = c + jnp.dot(x2, w_ref[dy, 2], preferred_element_type=jnp.float32)
        return c                         # (W, Cs) f32

    # Padded row k = i*TH + r feeds output rows k-dy (dy = 0,1,2), i.e. local
    # accumulator rows r, r-1, r-2.  The dy=0 visit is the first write to local
    # row r, so it assigns (no zero-init, no select on uninitialized scratch).
    @pl.when(r < th)
    def _():
        acc_ref[r] = contrib(0)

    @pl.when(jnp.logical_and(r >= 1, r <= th))
    def _():
        acc_ref[r - 1] += contrib(1)

    @pl.when(r >= 2)
    def _():
        acc_ref[r - 2] += contrib(2)

    # Finalize once per (sample, row-tile): bf16 y + f32 partial stats.
    @pl.when(r == th + 1)
    def _():
        acc = acc_ref[...]
        y_ref[...] = acc.astype(y_ref.dtype)
        s1_ref[...] = jnp.sum(acc, axis=(0, 1), keepdims=True).reshape(1, cs)
        s2_ref[...] = jnp.sum(acc * acc, axis=(0, 1), keepdims=True).reshape(1, cs)


def conv3x3_instnorm_stats(cat, w, *, th=None):
    """3x3 conv, pad=1, no bias, plus streaming two-pass InstanceNorm statistics.

    cat: (N, H, W, Cin) NHWC bf16;  w: (3, 3, Cin, Cs) indexed [dy, dx, cin, cout], bf16.
    Each padded input row is DMA'd once (plus a 2-row halo per tile) and the full
    3x3 weight stays resident in VMEM (constant index_map -> one DMA total).
    Returns un-normalized y (bf16) and per-tile f32 sum / sum-of-squares.
    """
    N, H, W, Cin = cat.shape
    Cs = w.shape[-1]
    if th is None:
        # Big tiles to amortize per-step overhead; keep >= 2 row-tiles per sample
        # when the batch alone cannot feed both v7x TensorCores.
        target = 32 if N >= 2 else max(1, min(32, H // 2))
        th = _pick_tile(H, target, quantum=1)
    TH = th
    assert H % TH == 0
    n_tiles = H // TH
    # TODO(synk): fold the zero halo into the kernel (clamped row index_map +
    # masked column taps) to remove this one extra HBM pass over `cat`.
    cat_p = jnp.pad(cat, ((0, 0), (1, 1), (1, 1), (0, 0)))

    cost = pl.CostEstimate(
        flops=int(2 * N * H * W * 9 * Cin * Cs),
        transcendentals=0,
        bytes_accessed=int(cat_p.size * cat_p.dtype.itemsize
                           + w.size * w.dtype.itemsize
                           + N * H * W * Cs * 2
                           + 2 * N * n_tiles * Cs * 4))

    y, s1, s2 = pl.pallas_call(
        _conv3x3_stats_kernel,
        out_shape=(
            jax.ShapeDtypeStruct((N, H, W, Cs), jnp.bfloat16),
            jax.ShapeDtypeStruct((N, n_tiles, 1, Cs), jnp.float32),
            jax.ShapeDtypeStruct((N, n_tiles, 1, Cs), jnp.float32),
        ),
        grid=(N, n_tiles, TH + 2),
        in_specs=[
            # one padded input row per step (auto-pipelined)
            pl.BlockSpec((None, None, W + 2, Cin),
                         lambda n, i, r: (n, i * TH + r, 0, 0)),
            # full 3x3 weight: constant block index -> fetched once, stays resident
            pl.BlockSpec((3, 3, Cin, Cs), lambda n, i, r: (0, 0, 0, 0)),
        ],
        out_specs=[
            pl.BlockSpec((None, TH, W, Cs), lambda n, i, r: (n, i, 0, 0)),
            pl.BlockSpec((None, None, 1, Cs), lambda n, i, r: (n, i, 0, 0)),
            pl.BlockSpec((None, None, 1, Cs), lambda n, i, r: (n, i, 0, 0)),
        ],
        scratch_shapes=[pltpu.VMEM((TH, W, Cs), jnp.float32)],
        compiler_params=pltpu.CompilerParams(
            dimension_semantics=("parallel", "parallel", "arbitrary"),
            vmem_limit_bytes=VMEM_LIMIT),
        cost_estimate=cost,
    )(cat_p, w)
    return y, s1, s2


# ---------------------------------------------------------------------------
# Kernel 2: InstanceNorm finalize + ReLU fused into the 1x1 classifier conv
# ---------------------------------------------------------------------------
def _norm_relu_classifier_kernel(y_ref, sc_ref, sh_ref, w_ref, b_ref, o_ref):
    # y_ref: (TP, Cs) un-normalized bottleneck rows (bf16)
    # sc/sh: (1, Cs)  per-sample scale = rstd, shift = -mean * rstd (f32)
    # w_ref: (Cs, Kp) classifier weight (bf16, lane-padded);  b_ref: (1, Kp) f32
    x = y_ref[...].astype(jnp.float32) * sc_ref[...] + sh_ref[...]
    x = jnp.maximum(x, 0.0).astype(w_ref.dtype)
    o_ref[...] = (jnp.dot(x, w_ref[...], preferred_element_type=jnp.float32)
                  + b_ref[...])


def norm_relu_classifier(y, scale, shift, w, b, *, row_tile=2048):
    N, P, Cs = y.shape
    Kp = w.shape[1]
    TP = _pick_tile(P, row_tile, quantum=8)
    cost = pl.CostEstimate(
        flops=int(2 * N * P * Cs * Kp),
        transcendentals=0,
        bytes_accessed=int(y.size * y.dtype.itemsize + w.size * w.dtype.itemsize
                           + N * P * Kp * 4 + 4 * N * Cs * 4))
    return pl.pallas_call(
        _norm_relu_classifier_kernel,
        out_shape=jax.ShapeDtypeStruct((N, P, Kp), jnp.float32),
        grid=(N, P // TP),
        in_specs=[
            pl.BlockSpec((None, TP, Cs), lambda n, p: (n, p, 0)),
            pl.BlockSpec((None, 1, Cs), lambda n, p: (n, 0, 0)),
            pl.BlockSpec((None, 1, Cs), lambda n, p: (n, 0, 0)),
            pl.BlockSpec((Cs, Kp), lambda n, p: (0, 0)),   # resident weight
            pl.BlockSpec((1, Kp), lambda n, p: (0, 0)),    # resident bias
        ],
        out_specs=pl.BlockSpec((None, TP, Kp), lambda n, p: (n, p, 0)),
        compiler_params=pltpu.CompilerParams(
            dimension_semantics=("parallel", "parallel"),
            vmem_limit_bytes=VMEM_LIMIT),
        cost_estimate=cost,
    )(y, scale, shift, w, b)


# ---------------------------------------------------------------------------
# Kernel 3: separable bilinear resize as two matmuls, output directly in NCHW
# ---------------------------------------------------------------------------
def _resize_nchw_kernel(l_ref, my_ref, mx_ref, o_ref):
    # l_ref: (H, W) one class-plane of one sample; my: (THo, H); mx: (W, Wo)
    rows = jnp.dot(my_ref[...], l_ref[...], preferred_element_type=jnp.float32)
    o_ref[...] = jnp.dot(rows, mx_ref[...], preferred_element_type=jnp.float32)


def bilinear_resize_to_nchw(x_chw, my, mx, *, row_tile=512):
    """x_chw: (N, C, H, W) -> (N, C, Ho, Wo) with Ho = my.shape[0], Wo = mx.shape[1]."""
    N, Cc, H, W = x_chw.shape
    Ho, Wo = my.shape[0], mx.shape[1]
    THo = _pick_tile(Ho, row_tile, quantum=8)
    return pl.pallas_call(
        _resize_nchw_kernel,
        out_shape=jax.ShapeDtypeStruct((N, Cc, Ho, Wo), jnp.float32),
        grid=(N, Cc, Ho // THo),
        in_specs=[
            pl.BlockSpec((None, None, H, W), lambda n, c, k: (n, c, 0, 0)),
            pl.BlockSpec((THo, H), lambda n, c, k: (k, 0)),
            pl.BlockSpec((W, Wo), lambda n, c, k: (0, 0)),
        ],
        out_specs=pl.BlockSpec((None, None, THo, Wo), lambda n, c, k: (n, c, k, 0)),
        compiler_params=pltpu.CompilerParams(
            dimension_semantics=("parallel", "parallel", "parallel"),
            vmem_limit_bytes=VMEM_LIMIT),
    )(x_chw, my, mx)


# ---------------------------------------------------------------------------
# Plain-JAX glue
# ---------------------------------------------------------------------------
# TODO(synk): AdaptiveAvgPool2d (<= 6x6 bins) and the tiny pyramid 1x1 conv
# stages are left in plain JAX/XLA — Pallas per-call overhead dominates there.
def adaptive_avg_pool_nhwc(x, out_sz):
    """nn.AdaptiveAvgPool2d semantics: bin i covers [floor(i*S/o), ceil((i+1)*S/o))."""
    N, H, W, C = x.shape
    rows = []
    for i in range(out_sz):
        hs, he = (i * H) // out_sz, -(-((i + 1) * H) // out_sz)
        cols = []
        for j in range(out_sz):
            ws, we = (j * W) // out_sz, -(-((j + 1) * W) // out_sz)
            cols.append(jnp.mean(x[:, hs:he, ws:we, :], axis=(1, 2)))
        rows.append(jnp.stack(cols, axis=1))
    return jnp.stack(rows, axis=1)  # (N, out_sz, out_sz, C)


def interp_matrix(out_size, in_size, align_corners):
    """Dense bilinear interpolation matrix (out_size, in_size); matches
    PyTorch F.interpolate's 1-D source-coordinate formula."""
    d = jnp.arange(out_size, dtype=jnp.float32)
    if align_corners:
        scale = (in_size - 1) / (out_size - 1) if out_size > 1 else 0.0
        s = d * scale
    else:
        s = jnp.maximum((d + 0.5) * (in_size / out_size) - 0.5, 0.0)
    i0 = jnp.clip(jnp.floor(s).astype(jnp.int32), 0, in_size - 1)
    i1 = jnp.minimum(i0 + 1, in_size - 1)
    f = (s - i0.astype(jnp.float32))[:, None]
    return (jax.nn.one_hot(i0, in_size, dtype=jnp.float32) * (1.0 - f)
            + jax.nn.one_hot(i1, in_size, dtype=jnp.float32) * f)


# ---------------------------------------------------------------------------
# Parameters + forward (eval mode: Dropout2d = identity, aux branch not run)
# ---------------------------------------------------------------------------
def init_params(key, in_channels, num_classes):
    C = in_channels
    Cs = C // len(BIN_SIZES)
    keys = jax.random.split(key, 8)

    def w(k, shape, fan_in):
        return jax.random.normal(k, shape, jnp.float32) / jnp.sqrt(float(fan_in))

    stage_w = [w(keys[i], (C, Cs), C) for i in range(4)]             # 1x1 convs
    bottleneck_w = w(keys[4], (3, 3, 2 * C, Cs), 9 * 2 * C)          # [dy, dx, cin, cout]
    cls_w = w(keys[5], (Cs, num_classes), Cs)                        # 1x1 classifier
    cls_b = jnp.zeros((num_classes,), jnp.float32)
    # Auxiliary branch params exist in __init__ but are unused at inference.
    aux_w1 = w(keys[6], (3, 3, C, C // 2), 9 * C)
    aux_w2 = w(keys[7], (C // 2, num_classes), C // 2)
    aux_b2 = jnp.zeros((num_classes,), jnp.float32)
    return dict(stage_w=stage_w, bottleneck_w=bottleneck_w, cls_w=cls_w,
                cls_b=cls_b, aux_w1=aux_w1, aux_w2=aux_w2, aux_b2=aux_b2)


def pspnet_forward(params, x_nchw, num_classes):
    N, C, H, W = x_nchw.shape
    Cs = C // len(BIN_SIZES)
    x = jnp.transpose(x_nchw, (0, 2, 3, 1)).astype(jnp.float32)      # NCHW -> NHWC
    input_size = (32 * H, 32 * W) if N % 6 == 0 else (512, 1024)

    # ----- _PSPModule pyramid stages (tiny: <= 36 pixels each; plain JAX) -----
    pyramids = [x.astype(jnp.bfloat16)]
    for b, w_st in zip(BIN_SIZES, params["stage_w"]):
        pooled = adaptive_avg_pool_nhwc(x, b).reshape(N, b * b, C)
        y = jnp.einsum('npc,cd->npd', pooled, w_st)
        mean = jnp.mean(y, axis=1, keepdims=True)
        var = jnp.mean(jnp.square(y - mean), axis=1, keepdims=True)  # biased
        y = jnp.maximum((y - mean) * jax.lax.rsqrt(var + EPS), 0.0)
        y = y.reshape(N, b, b, Cs)
        my = interp_matrix(H, b, align_corners=True)
        mx = interp_matrix(W, b, align_corners=True)
        pyramids.append(jnp.einsum('Hh,nhwc,Ww->nHWc', my, y, mx).astype(jnp.bfloat16))
    cat = jnp.concatenate(pyramids, axis=-1)                         # (N, H, W, 2C) bf16

    # ----- bottleneck 3x3 conv + streaming IN stats (Pallas, bf16 / f32 acc) -----
    yb, ssum, ssq = conv3x3_instnorm_stats(
        cat, params["bottleneck_w"].astype(jnp.bfloat16))
    cnt = float(H * W)
    mean = jnp.sum(ssum, axis=(1, 2)) / cnt                          # (N, Cs)
    msq = jnp.sum(ssq, axis=(1, 2)) / cnt                            # (N, Cs)
    var = jnp.maximum(msq - mean * mean, 0.0)                        # f32, biased
    rstd = jax.lax.rsqrt(var + EPS)
    scale = rstd[:, None, :]                                         # (N, 1, Cs)
    shift = (-mean * rstd)[:, None, :]

    # ----- classifier 1x1 conv fused with InstanceNorm finalize + ReLU (Pallas) -----
    kp = max(128, -(-num_classes // 128) * 128)                      # lane-dense output
    wc = (jnp.zeros((Cs, kp), jnp.float32)
          .at[:, :num_classes].set(params["cls_w"]).astype(jnp.bfloat16))
    bc = jnp.zeros((1, kp), jnp.float32).at[0, :num_classes].set(params["cls_b"])
    logits = norm_relu_classifier(yb.reshape(N, H * W, Cs), scale, shift, wc, bc)
    logits = logits[:, :, :num_classes].reshape(N, H, W, num_classes)

    # ----- final F.interpolate (bilinear, align_corners=False) as separable
    #       matmuls inside Pallas, written directly in NCHW layout -----
    Ho, Wo = input_size
    my = interp_matrix(Ho, H, align_corners=False)                   # (Ho, H)
    mx = interp_matrix(Wo, W, align_corners=False).T                 # (W, Wo)
    out = bilinear_resize_to_nchw(jnp.transpose(logits, (0, 3, 1, 2)), my, mx)
    # output[:, :, :Ho, :Wo] slice in the reference is a no-op; aux branch is
    # skipped in eval mode (`self.training and self.use_aux` is False).
    return out                                                       # (N, nc, Ho, Wo)


if __name__ == "__main__":
    key = jax.random.PRNGKey(0)
    k_x, k_p = jax.random.split(key)

    # Small stand-in for (N, 1024, H, W); in_channels must be divisible by 4.
    N, C, H, W = 2, 64, 8, 8
    num_classes = 5

    x = jax.random.normal(k_x, (N, C, H, W), jnp.float32)
    params = init_params(k_p, C, num_classes)

    # --- targeted numerical check of the restructured fused conv kernel ---
    Cin_t, Cs_t = 2 * C, C // len(BIN_SIZES)
    k1, k2 = jax.random.split(jax.random.PRNGKey(1))
    xt = jax.random.normal(k1, (N, H, W, Cin_t), jnp.float32).astype(jnp.bfloat16)
    wt = (jax.random.normal(k2, (3, 3, Cin_t, Cs_t), jnp.float32)
          / ((9.0 * Cin_t) ** 0.5)).astype(jnp.bfloat16)
    yb_t, _, _ = jax.jit(functools.partial(conv3x3_instnorm_stats, th=4))(xt, wt)
    ref_t = jax.lax.conv_general_dilated(
        xt.astype(jnp.float32), wt.astype(jnp.float32),
        window_strides=(1, 1), padding=((1, 1), (1, 1)),
        dimension_numbers=("NHWC", "HWIO", "NHWC"))
    err = float(jnp.max(jnp.abs(yb_t.astype(jnp.float32) - ref_t)))
    ref_mag = float(jnp.max(jnp.abs(ref_t)))
    assert err <= 2e-2 * ref_mag + 1e-3, (err, ref_mag)

    fwd = jax.jit(functools.partial(pspnet_forward, num_classes=num_classes))
    out = jax.block_until_ready(fwd(params, x))

    expected_hw = (32 * H, 32 * W) if N % 6 == 0 else (512, 1024)
    assert out.shape == (N, num_classes) + expected_hw, out.shape
    assert bool(jnp.all(jnp.isfinite(out)))
    print("KERNEL_OK")
</pallas_src>

<mosaic_0001>
module attributes {stable_mosaic.version = 11 : i64} {
  func.func @_conv3x3_stats_kernel(%arg0: i32, %arg1: i32, %arg2: i32, %arg3: memref<1x1x10x128xbf16, #tpu.memory_space<vmem>>, %arg4: memref<3x3x128x16xbf16, #tpu.memory_space<vmem>>, %arg5: memref<1x4x8x16xbf16, #tpu.memory_space<vmem>>, %arg6: memref<1x1x1x16xf32, #tpu.memory_space<vmem>>, %arg7: memref<1x1x1x16xf32, #tpu.memory_space<vmem>>, %arg8: memref<4x8x16xf32, #tpu.memory_space<vmem>>) attributes {dimension_semantics = [#tpu.dimension_semantics<parallel>, #tpu.dimension_semantics<parallel>, #tpu.dimension_semantics<arbitrary>], iteration_bounds = array<i64: 2, 2, 6>, scalar_prefetch = 0 : i64, scratch_operands = 1 : i64, tpu.core_type = #tpu.core_type<tc>, window_params = [{transform_indices = @transform_0, window_bounds = array<i64: 1, 1, 10, 128>}, {pipeline_mode = #tpu.pipeline_mode<synchronous>, transform_indices = @transform_1, window_bounds = array<i64: 3, 3, 128, 16>}, {transform_indices = @transform_2, window_bounds = array<i64: 1, 4, 8, 16>}, {transform_indices = @transform_3, window_bounds = array<i64: 1, 1, 1, 16>}, {transform_indices = @transform_4, window_bounds = array<i64: 1, 1, 1, 16>}]} {
    %c0 = arith.constant 0 : index
    %c0_0 = arith.constant 0 : index
    %c0_1 = arith.constant 0 : index
    %c0_2 = arith.constant 0 : index
    %0 = vector.load %arg3[%c0, %c0_0, %c0_1, %c0_2] : memref<1x1x10x128xbf16, #tpu.memory_space<vmem>>, vector<1x1x10x128xbf16>
    %1 = vector.shape_cast %0 : vector<1x1x10x128xbf16> to vector<10x128xbf16>
    %2 = vector.extract_strided_slice %1 {offsets = [0, 0], sizes = [8, 128], strides = [1, 1]} : vector<10x128xbf16> to vector<8x128xbf16>
    %3 = vector.extract_strided_slice %1 {offsets = [1, 0], sizes = [8, 128], strides = [1, 1]} : vector<10x128xbf16> to vector<8x128xbf16>
    %4 = vector.extract_strided_slice %1 {offsets = [2, 0], sizes = [8, 128], strides = [1, 1]} : vector<10x128xbf16> to vector<8x128xbf16>
    %c4_i32 = arith.constant 4 : i32
    %5 = arith.cmpi slt, %arg2, %c4_i32 : i32
    %6 = arith.extui %5 : i1 to i32
    %c0_i32 = arith.constant 0 : i32
    %7 = arith.cmpi ne, %6, %c0_i32 : i32
    scf.if %7 {
      %c0_7 = arith.constant 0 : index
      %c0_8 = arith.constant 0 : index
      %c0_9 = arith.constant 0 : index
      %c0_10 = arith.constant 0 : index
      %19 = vector.load %arg4[%c0_7, %c0_8, %c0_9, %c0_10] : memref<3x3x128x16xbf16, #tpu.memory_space<vmem>>, vector<1x1x128x16xbf16>
      %20 = vector.shape_cast %19 : vector<1x1x128x16xbf16> to vector<128x16xbf16>
      %cst = arith.constant dense<0.000000e+00> : vector<8x16xf32>
      %21 = tpu.matmul %2, %20, %cst {dimension_numbers = #tpu.dot_dimension_numbers<[1], [0], [0], [1], [0, 0, 1, 1], [], []>} : vector<8x128xbf16>, vector<128x16xbf16>, vector<8x16xf32> -> vector<8x16xf32>
      %c0_11 = arith.constant 0 : index
      %c1 = arith.constant 1 : index
      %c0_12 = arith.constant 0 : index
      %c0_13 = arith.constant 0 : index
      %22 = vector.load %arg4[%c0_11, %c1, %c0_12, %c0_13] : memref<3x3x128x16xbf16, #tpu.memory_space<vmem>>, vector<1x1x128x16xbf16>
      %23 = vector.shape_cast %22 : vector<1x1x128x16xbf16> to vector<128x16xbf16>
      %cst_14 = arith.constant dense<0.000000e+00> : vector<8x16xf32>
      %24 = tpu.matmul %3, %23, %cst_14 {dimension_numbers = #tpu.dot_dimension_numbers<[1], [0], [0], [1], [0, 0, 1, 1], [], []>} : vector<8x128xbf16>, vector<128x16xbf16>, vector<8x16xf32> -> vector<8x16xf32>
      %25 = arith.addf %21, %24 : vector<8x16xf32>
      %c0_15 = arith.constant 0 : index
      %c2 = arith.constant 2 : index
      %c0_16 = arith.constant 0 : index
      %c0_17 = arith.constant 0 : index
      %26 = vector.load %arg4[%c0_15, %c2, %c0_16, %c0_17] : memref<3x3x128x16xbf16, #tpu.memory_space<vmem>>, vector<1x1x128x16xbf16>
      %27 = vector.shape_cast %26 : vector<1x1x128x16xbf16> to vector<128x16xbf16>
      %cst_18 = arith.constant dense<0.000000e+00> : vector<8x16xf32>
      %28 = tpu.matmul %4, %27, %cst_18 {dimension_numbers = #tpu.dot_dimension_numbers<[1], [0], [0], [1], [0, 0, 1, 1], [], []>} : vector<8x128xbf16>, vector<128x16xbf16>, vector<8x16xf32> -> vector<8x16xf32>
      %29 = arith.addf %25, %28 : vector<8x16xf32>
      %30 = arith.index_cast %arg2 : i32 to index
      %c0_19 = arith.constant 0 : index
      %c0_20 = arith.constant 0 : index
      %31 = vector.load %arg8[%30, %c0_19, %c0_20] : memref<4x8x16xf32, #tpu.memory_space<vmem>>, vector<1x8x16xf32>
      %32 = vector.shape_cast %31 : vector<1x8x16xf32> to vector<8x16xf32>
      %33 = vector.shape_cast %29 : vector<8x16xf32> to vector<1x8x16xf32>
      tpu.vector_store %arg8[%30, %c0_19, %c0_20], %33 {strides = array<i32>} : memref<4x8x16xf32, #tpu.memory_space<vmem>>, vector<1x8x16xf32>,
    } else {
    }
    %c1_i32 = arith.constant 1 : i32
    %8 = arith.cmpi sge, %arg2, %c1_i32 : i32
    %c4_i32_3 = arith.constant 4 : i32
    %9 = arith.cmpi sle, %arg2, %c4_i32_3 : i32
    %10 = arith.andi %8, %9 : i1
    %11 = arith.extui %10 : i1 to i32
    %c0_i32_4 = arith.constant 0 : i32
    %12 = arith.cmpi ne, %11, %c0_i32_4 : i32
    scf.if %12 {
      %c1_i32_7 = arith.constant 1 : i32
      %19 = arith.subi %arg2, %c1_i32_7 : i32
      %20 = arith.index_cast %19 : i32 to index
      %c0_8 = arith.constant 0 : index
      %c0_9 = arith.constant 0 : index
      %21 = vector.load %arg8[%20, %c0_8, %c0_9] : memref<4x8x16xf32, #tpu.memory_space<vmem>>, vector<1x8x16xf32>
      %22 = vector.shape_cast %21 : vector<1x8x16xf32> to vector<8x16xf32>
      %c1 = arith.constant 1 : index
      %c0_10 = arith.constant 0 : index
      %c0_11 = arith.constant 0 : index
      %c0_12 = arith.constant 0 : index
      %23 = vector.load %arg4[%c1, %c0_10, %c0_11, %c0_12] : memref<3x3x128x16xbf16, #tpu.memory_space<vmem>>, vector<1x1x128x16xbf16>
      %24 = vector.shape_cast %23 : vector<1x1x128x16xbf16> to vector<128x16xbf16>
      %cst = arith.constant dense<0.000000e+00> : vector<8x16xf32>
      %25 = tpu.matmul %2, %24, %cst {dimension_numbers = #tpu.dot_dimension_numbers<[1], [0], [0], [1], [0, 0, 1, 1], [], []>} : vector<8x128xbf16>, vector<128x16xbf16>, vector<8x16xf32> -> vector<8x16xf32>
      %c1_13 = arith.constant 1 : index
      %c1_14 = arith.constant 1 : index
      %c0_15 = arith.constant 0 : index
      %c0_16 = arith.constant 0 : index
      %26 = vector.load %arg4[%c1_13, %c1_14, %c0_15, %c0_16] : memref<3x3x128x16xbf16, #tpu.memory_space<vmem>>, vector<1x1x128x16xbf16>
      %27 = vector.shape_cast %26 : vector<1x1x128x16xbf16> to vector<128x16xbf16>
      %cst_17 = arith.constant dense<0.000000e+00> : vector<8x16xf32>
      %28 = tpu.matmul %3, %27, %cst_17 {dimension_numbers = #tpu.dot_dimension_numbers<[1], [0], [0], [1], [0, 0, 1, 1], [], []>} : vector<8x128xbf16>, vector<128x16xbf16>, vector<8x16xf32> -> vector<8x16xf32>
      %29 = arith.addf %25, %28 : vector<8x16xf32>
      %c1_18 = arith.constant 1 : index
      %c2 = arith.constant 2 : index
      %c0_19 = arith.constant 0 : index
      %c0_20 = arith.constant 0 : index
      %30 = vector.load %arg4[%c1_18, %c2, %c0_19, %c0_20] : memref<3x3x128x16xbf16, #tpu.memory_space<vmem>>, vector<1x1x128x16xbf16>
      %31 = vector.shape_cast %30 : vector<1x1x128x16xbf16> to vector<128x16xbf16>
      %cst_21 = arith.constant dense<0.000000e+00> : vector<8x16xf32>
      %32 = tpu.matmul %4, %31, %cst_21 {dimension_numbers = #tpu.dot_dimension_numbers<[1], [0], [0], [1], [0, 0, 1, 1], [], []>} : vector<8x128xbf16>, vector<128x16xbf16>, vector<8x16xf32> -> vector<8x16xf32>
      %33 = arith.addf %29, %32 : vector<8x16xf32>
      %34 = arith.addf %22, %33 : vector<8x16xf32>
      %35 = arith.index_cast %19 : i32 to index
      %c0_22 = arith.constant 0 : index
      %c0_23 = arith.constant 0 : index
      %36 = vector.load %arg8[%35, %c0_22, %c0_23] : memref<4x8x16xf32, #tpu.memory_space<vmem>>, vector<1x8x16xf32>
      %37 = vector.shape_cast %36 : vector<1x8x16xf32> to vector<8x16xf32>
      %38 = vector.shape_cast %34 : vector<8x16xf32> to vector<1x8x16xf32>
      tpu.vector_store %arg8[%35, %c0_22, %c0_23], %38 {strides = array<i32>} : memref<4x8x16xf32, #tpu.memory_space<vmem>>, vector<1x8x16xf32>,
    } else {
    }
    %c2_i32 = arith.constant 2 : i32
    %13 = arith.cmpi sge, %arg2, %c2_i32 : i32
    %14 = arith.extui %13 : i1 to i32
    %c0_i32_5 = arith.constant 0 : i32
    %15 = arith.cmpi ne, %14, %c0_i32_5 : i32
    scf.if %15 {
      %c2_i32_7 = arith.constant 2 : i32
      %19 = arith.subi %arg2, %c2_i32_7 : i32
      %20 = arith.index_cast %19 : i32 to index
      %c0_8 = arith.constant 0 : index
      %c0_9 = arith.constant 0 : index
      %21 = vector.load %arg8[%20, %c0_8, %c0_9] : memref<4x8x16xf32, #tpu.memory_space<vmem>>, vector<1x8x16xf32>
      %22 = vector.shape_cast %21 : vector<1x8x16xf32> to vector<8x16xf32>
      %c2 = arith.constant 2 : index
      %c0_10 = arith.constant 0 : index
      %c0_11 = arith.constant 0 : index
      %c0_12 = arith.constant 0 : index
      %23 = vector.load %arg4[%c2, %c0_10, %c0_11, %c0_12] : memref<3x3x128x16xbf16, #tpu.memory_space<vmem>>, vector<1x1x128x16xbf16>
      %24 = vector.shape_cast %23 : vector<1x1x128x16xbf16> to vector<128x16xbf16>
      %cst = arith.constant dense<0.000000e+00> : vector<8x16xf32>
      %25 = tpu.matmul %2, %24, %cst {dimension_numbers = #tpu.dot_dimension_numbers<[1], [0], [0], [1], [0, 0, 1, 1], [], []>} : vector<8x128xbf16>, vector<128x16xbf16>, vector<8x16xf32> -> vector<8x16xf32>
      %c2_13 = arith.constant 2 : index
      %c1 = arith.constant 1 : index
      %c0_14 = arith.constant 0 : index
      %c0_15 = arith.constant 0 : index
      %26 = vector.load %arg4[%c2_13, %c1, %c0_14, %c0_15] : memref<3x3x128x16xbf16, #tpu.memory_space<vmem>>, vector<1x1x128x16xbf16>
      %27 = vector.shape_cast %26 : vector<1x1x128x16xbf16> to vector<128x16xbf16>
      %cst_16 = arith.constant dense<0.000000e+00> : vector<8x16xf32>
      %28 = tpu.matmul %3, %27, %cst_16 {dimension_numbers = #tpu.dot_dimension_numbers<[1], [0], [0], [1], [0, 0, 1, 1], [], []>} : vector<8x128xbf16>, vector<128x16xbf16>, vector<8x16xf32> -> vector<8x16xf32>
      %29 = arith.addf %25, %28 : vector<8x16xf32>
      %c2_17 = arith.constant 2 : index
      %c2_18 = arith.constant 2 : index
      %c0_19 = arith.constant 0 : index
      %c0_20 = arith.constant 0 : index
      %30 = vector.load %arg4[%c2_17, %c2_18, %c0_19, %c0_20] : memref<3x3x128x16xbf16, #tpu.memory_space<vmem>>, vector<1x1x128x16xbf16>
      %31 = vector.shape_cast %30 : vector<1x1x128x16xbf16> to vector<128x16xbf16>
      %cst_21 = arith.constant dense<0.000000e+00> : vector<8x16xf32>
      %32 = tpu.matmul %4, %31, %cst_21 {dimension_numbers = #tpu.dot_dimension_numbers<[1], [0], [0], [1], [0, 0, 1, 1], [], []>} : vector<8x128xbf16>, vector<128x16xbf16>, vector<8x16xf32> -> vector<8x16xf32>
      %33 = arith.addf %29, %32 : vector<8x16xf32>
      %34 = arith.addf %22, %33 : vector<8x16xf32>
      %35 = arith.index_cast %19 : i32 to index
      %c0_22 = arith.constant 0 : index
      %c0_23 = arith.constant 0 : index
      %36 = vector.load %arg8[%35, %c0_22, %c0_23] : memref<4x8x16xf32, #tpu.memory_space<vmem>>, vector<1x8x16xf32>
      %37 = vector.shape_cast %36 : vector<1x8x16xf32> to vector<8x16xf32>
      %38 = vector.shape_cast %34 : vector<8x16xf32> to vector<1x8x16xf32>
      tpu.vector_store %arg8[%35, %c0_22, %c0_23], %38 {strides = array<i32>} : memref<4x8x16xf32, #tpu.memory_space<vmem>>, vector<1x8x16xf32>,
    } else {
    }
    %c5_i32 = arith.constant 5 : i32
    %16 = arith.cmpi eq, %arg2, %c5_i32 : i32
    %17 = arith.extui %16 : i1 to i32
    %c0_i32_6 = arith.constant 0 : i32
    %18 = arith.cmpi ne, %17, %c0_i32_6 : i32
    scf.if %18 {
      %c0_7 = arith.constant 0 : index
      %c0_8 = arith.constant 0 : index
      %c0_9 = arith.constant 0 : index
      %19 = vector.load %arg8[%c0_7, %c0_8, %c0_9] : memref<4x8x16xf32, #tpu.memory_space<vmem>>, vector<4x8x16xf32>
      %20 = arith.truncf %19 : vector<4x8x16xf32> to vector<4x8x16xbf16>
      %c0_10 = arith.constant 0 : index
      %c0_11 = arith.constant 0 : index
      %c0_12 = arith.constant 0 : index
      %c0_13 = arith.constant 0 : index
      %21 = vector.load %arg5[%c0_10, %c0_11, %c0_12, %c0_13] : memref<1x4x8x16xbf16, #tpu.memory_space<vmem>>, vector<1x4x8x16xbf16>
      %22 = vector.shape_cast %21 : vector<1x4x8x16xbf16> to vector<4x8x16xbf16>
      %23 = vector.shape_cast %20 : vector<4x8x16xbf16> to vector<1x4x8x16xbf16>
      tpu.vector_store %arg5[%c0_10, %c0_11, %c0_12, %c0_13], %23 {strides = array<i32>} : memref<1x4x8x16xbf16, #tpu.memory_space<vmem>>, vector<1x4x8x16xbf16>,
      %cst = arith.constant dense<0.000000e+00> : vector<16xf32>
      %24 = vector.multi_reduction <add>, %19, %cst [0, 1] : vector<4x8x16xf32> to vector<16xf32>
      %25 = vector.shape_cast %24 : vector<16xf32> to vector<1x1x16xf32>
      %26 = vector.shape_cast %25 : vector<1x1x16xf32> to vector<1x16xf32>
      %c0_14 = arith.constant 0 : index
      %c0_15 = arith.constant 0 : index
      %c0_16 = arith.constant 0 : index
      %c0_17 = arith.constant 0 : index
      %27 = vector.load %arg6[%c0_14, %c0_15, %c0_16, %c0_17] : memref<1x1x1x16xf32, #tpu.memory_space<vmem>>, vector<1x1x1x16xf32>
      %28 = vector.shape_cast %27 : vector<1x1x1x16xf32> to vector<1x16xf32>
      %29 = vector.shape_cast %26 : vector<1x16xf32> to vector<1x1x1x16xf32>
      tpu.vector_store %arg6[%c0_14, %c0_15, %c0_16, %c0_17], %29 {strides = array<i32>} : memref<1x1x1x16xf32, #tpu.memory_space<vmem>>, vector<1x1x1x16xf32>,
      %30 = arith.mulf %19, %19 : vector<4x8x16xf32>
      %cst_18 = arith.constant dense<0.000000e+00> : vector<16xf32>
      %31 = vector.multi_reduction <add>, %30, %cst_18 [0, 1] : vector<4x8x16xf32> to vector<16xf32>
      %32 = vector.shape_cast %31 : vector<16xf32> to vector<1x1x16xf32>
      %33 = vector.shape_cast %32 : vector<1x1x16xf32> to vector<1x16xf32>
      %c0_19 = arith.constant 0 : index
      %c0_20 = arith.constant 0 : index
      %c0_21 = arith.constant 0 : index
      %c0_22 = arith.constant 0 : index
      %34 = vector.load %arg7[%c0_19, %c0_20, %c0_21, %c0_22] : memref<1x1x1x16xf32, #tpu.memory_space<vmem>>, vector<1x1x1x16xf32>
      %35 = vector.shape_cast %34 : vector<1x1x1x16xf32> to vector<1x16xf32>
      %36 = vector.shape_cast %33 : vector<1x16xf32> to vector<1x1x1x16xf32>
      tpu.vector_store %arg7[%c0_19, %c0_20, %c0_21, %c0_22], %36 {strides = array<i32>} : memref<1x1x1x16xf32, #tpu.memory_space<vmem>>, vector<1x1x1x16xf32>,
    } else {
    }
    return
  }
  func.func @transform_0(%arg0: i32, %arg1: i32, %arg2: i32) -> (i32, i32, i32, i32) {
    %c4_i32 = arith.constant 4 : i32
    %0 = arith.muli %arg1, %c4_i32 : i32
    %1 = arith.addi %0, %arg2 : i32
    %c0_i32 = arith.constant 0 : i32
    %c0_i32_0 = arith.constant 0 : i32
    %c0_i32_1 = arith.constant 0 : i32
    return %arg0, %1, %c0_i32, %c0_i32_0 : i32, i32, i32, i32
  }
  func.func @transform_1(%arg0: i32, %arg1: i32, %arg2: i32) -> (i32, i32, i32, i32) {
    %c0_i32 = arith.constant 0 : i32
    %c0_i32_0 = arith.constant 0 : i32
    %c0_i32_1 = arith.constant 0 : i32
    %c0_i32_2 = arith.constant 0 : i32
    %c0_i32_3 = arith.constant 0 : i32
    return %c0_i32, %c0_i32_0, %c0_i32_1, %c0_i32_2 : i32, i32, i32, i32
  }
  func.func @transform_2(%arg0: i32, %arg1: i32, %arg2: i32) -> (i32, i32, i32, i32) {
    %c0_i32 = arith.constant 0 : i32
    %c0_i32_0 = arith.constant 0 : i32
    %c0_i32_1 = arith.constant 0 : i32
    return %arg0, %arg1, %c0_i32, %c0_i32_0 : i32, i32, i32, i32
  }
  func.func @transform_3(%arg0: i32, %arg1: i32, %arg2: i32) -> (i32, i32, i32, i32) {
    %c0_i32 = arith.constant 0 : i32
    %c0_i32_0 = arith.constant 0 : i32
    %c0_i32_1 = arith.constant 0 : i32
    return %arg0, %arg1, %c0_i32, %c0_i32_0 : i32, i32, i32, i32
  }
  func.func @transform_4(%arg0: i32, %arg1: i32, %arg2: i32) -> (i32, i32, i32, i32) {
    %c0_i32 = arith.constant 0 : i32
    %c0_i32_0 = arith.constant 0 : i32
    %c0_i32_1 = arith.constant 0 : i32
    return %arg0, %arg1, %c0_i32, %c0_i32_0 : i32, i32, i32, i32
  }
}

</mosaic_0001>

<bundles_post_ra>
// kernel: conv3x3_instnorm_stats.1
= control target key start
LH: loop header
LB: loop body
LE: loop exit
PB: predicated region body
PF: predicated region fallthrough
CT: control target
= control target key end

     0   :  { %s3026_s0 = inlined_call_operand.vmem [shape: bf16[2,10,10,128], index: 0, kind: input, shape index: {}]   ;;  %s3027_s1 = inlined_call_operand.vmem [shape: bf16[3,3,128,16], index: 1, kind: input, shape index: {}]   ;;  %s3028_s2 = inlined_call_operand.hbm [shape: bf16[2,8,8,16], index: 2, kind: output, shape index: {0}]   ;;  %s3029_s3 = inlined_call_operand.hbm [shape: f32[2,2,1,16], index: 3, kind: output, shape index: {1}]   ;;  %s3030_s4 = inlined_call_operand.hbm [shape: f32[2,2,1,16], index: 4, kind: output, shape index: {2}]  }
   0x1   :  { %3039 = sst [smem:[#allocation15_spill]] %s3026_s0 }
   0x2   :  { %3040 = sst [smem:[#allocation16_spill]] %s3027_s1 }
   0x3   :  { %10 = vsyncpa [#allocation4], 0 }
   0x4   :  { %12 = vsyncpa [#allocation4 + $0x1], 0 }
   0x5   :  { %13 = vsyncpa [#allocation6], 0 }
   0x6   :  { %15 = vsyncpa [#allocation6 + $0x1], 0  ;;  %s2436_s15 = smov 0   ;;  %s2438_s16 = smov 0  }
   0x7   :  { %s2440_s17 = smov 0   ;;  %s2442_s18 = smov 0  }
   0x8   :  { %s2444_s19 = smov 0   ;;  %s2446_s20 = smov 0  }
   0x9   :  { %s2448_s21 = smov 0   ;;  %s2450_s22 = smov 0  }
   0xa   :  { %s2452_s23 = smov 0   ;;  %s2454_s24 = smov 0  }
   0xb LB: > { %3041 = sst [smem:[#allocation10_spill]] %s2390_s22  ;;  %s3032_s25 = sadd.s32 4294967295, %s2398_s24   ;;  %s2398_s24 = sphi %s2454_s24, %s21_s24   ;;  %s2394_s23 = sphi %s2452_s23, %s3060_s23   ;;  %s2390_s22 = sphi %s2450_s22, %s3059_s22   ;;  %s2386_s21 = sphi %s2448_s21, %s3065_s21   ;;  %s2382_s20 = sphi %s2446_s20, %s3057_s20   ;;  %s2378_s19 = sphi %s2444_s19, %s3056_s19   ;;  %s2374_s18 = sphi %s2442_s18, %s3064_s18   ;;  %s2370_s17 = sphi %s2440_s17, %s3063_s17   ;;  %s2366_s16 = sphi %s2438_s16, %s3062_s16   ;;  %s2362_s15 = sphi %s2436_s15, %s3061_s15  }
   0xc   : > { %3042 = sst [smem:[#allocation11_spill]] %s2394_s23  ;;  %s3031_s26 = sadd.s32 4294967294, %s2398_s24  }
   0xd   : > { %s33_s27 = sadd.s32 1, %s2386_s21  ;;  %s36_s28 = sadd.s32 1, %s2390_s22 }
   0xe   : > { %p34_p0 = scmp.ge.s32.totalorder %s33_s27, 6  ;;  %s40_s29 = sadd.s32 1, %s2394_s23 }
   0xf   : > { %p112_p1 = scmp.ne.s32.totalorder %s2370_s17, %s2366_s16  ;;  %p113_p2 = scmp.eq.s32.totalorder %s3032_s25, 23 }
  0x10   : > { %s3067_s27 = smov (%p34_p0, %s33_s27), 0  ;;  %s3069_s28 = smov (!%p34_p0, %s36_s28), %s2390_s22 }
  0x11   : > { %3043 = sst [smem:[#allocation12_spill]] %s3067_s27  ;;  %p118_p3 = scmp.ne.s32.totalorder %s2366_s16, %s2362_s15 }
  0x12   : > { %p38_p4 = scmp.ge.s32.totalorder %s3069_s28, 2  ;;  %p119_p5 = scmp.eq.s32.totalorder %s3031_s26, 23 }
  0x13   : > { %p2502_p6 = por %p113_p2, %p112_p1  ;;  %p1558_p8 = scmp.ge.s32.totalorder %s2398_s24, 1 }
  0x14   : > { %s3071_s28 = smov (%p38_p4, %s3069_s28), 0  ;;  %s3073_s29 = smov (!%p38_p4, %s40_s29), %s2394_s23 }
  0x15   : > { %3045 = sst [smem:[#allocation13_spill]] %s3071_s28  ;;  %p2509_p7 = por %p119_p5, %p118_p3 }
  0x16   : > { %p42_p9 = scmp.ge.s32.totalorder %s3073_s29, 2  ;;  %p212_p10 = scmp.lt.s32.totalorder %s2398_s24, 25 }
  0x17   : > { %s98_s6 = ssub.s32 %s2390_s22, %s3071_s28  ;;  %s102_s9 = sadd.s32 1, %s2370_s17 }
  0x18   : > { %s3075_s29 = smov (%p42_p9, %s3073_s29), 0  ;;  %p213_p11 = pnand %p1558_p8, %p212_p10 }
  0x19   : > { %3047 = sst [smem:[#allocation14_spill]] %s3075_s29  ;;  %s97_s7 = ssub.s32 %s2394_s23, %s3075_s29 }
  0x1a   : > { %s99_s8 = sor.u32 %s98_s6, %s97_s7  ;;  %216 = sbr.rel (%p213_p11) target bundleno = 1007 (0x3ef), region = 28 }
  0x1b   : > { %p100_p12 = scmp.eq.s32.totalorder %s99_s8, 0  ;;  %s2526_s11 = sand.u32 (!%p213_p11), 1, %s2366_s16  }
  0x1c   : > { %s3036_s12 = sshll.u32 (!%p213_p11), %s2378_s19, 2  ;;  %s1559_s13 = sshll.u32 (!%p213_p11), %s2526_s11, 4 }
  0x1d   : > { %s2523_s10 = scalar_select %p100_p12, %s2370_s17, %s102_s9  }
  0x1e   : > { %s253_s14 = sadd.s32 (!%p213_p11), %s2374_s18, %s3036_s12  ;;  %p254_p13 = scmp.lt.s32.totalorder (!%p213_p11), %s2382_s20, 1 }
  0x1f   : > { %p256_p0 = scmp.lt.s32.totalorder (!%p213_p11), %s253_s14, 9  ;;  %s3048_s0 = sld [smem:[#allocation15_spill]] (!%p213_p11) }
  0x20   : > { %s2542_s27 = scalar_lea.vmem (!%p213_p11), [#allocation3], %s1559_s13  ;;  %s245_s23 = scalar_lea.vmem (!%p213_p11), [#allocation5], %s2526_s11 }
  0x21   : > { %s255_s6 = scalar_select %p254_p13, %s2382_s20, 1 }
  0x22   : > { %s3077_s14 = smov (!%p256_p0, %s253_s14), 9  ;;  %s3038_s12 = scalar_lea.vmem [#allocation7], %s2526_s11 }
  0x23   : > { %s2050_s7 = smul.u32 20, %s255_s6  ;;  %s1561_s8 = sshll.u32 %s3077_s14, 1 }
  0x24   : > { %p1563_p1 = scmp.ge.s32.totalorder %s2374_s18, 4 }
  0x25   : > { %s260_s9 = sadd.s32 %s2050_s7, %s1561_s8  ;;  %s3049_s1 = sld [smem:[#allocation16_spill]] (!%p1563_p1)  ;;  %v2400_v3 = vmov (!%p1563_p1), 0.0   ;;  %vm2401_vm0 = vmmov (!%p1563_p1), 0   ;;  %vm605_vm1 = vcmask (!%p1563_p1), 130048  }
  0x26   : > { %s1562_s26 = sshll.u32 %s260_s9, 2  ;;  %272 = sbr.rel (%p1563_p1) target bundleno = 322 (0x142), region = 32  ;;  %1885 = vmatprep.subr.bf16.mxu0 (!%p1563_p1), %v2400_v3  ;;  %1865 = vmatprep.subr.bf16.mxu1 (!%p1563_p1), %v2400_v3 }
  0x27   : > { %s262_s28 = scalar_lea.vmem %s3048_s0, %s1562_s26  ;;  %1901 = vmatprep.mubr.msk.bf16.mxu0 (!%p1563_p1), %vm2401_vm0, %v2400_v3  ;;  %1881 = vmatprep.mubr.msk.bf16.mxu1 (!%p1563_p1), %vm2401_vm0, %v2400_v3  ;;  %s1621_s22 = sshll.u32 (!%p1563_p1), %s2374_s18, 3 }
  0x28   : > { %v2538_v0 = vld [vmem:[%s262_s28] sm:$0xf]  ;;  %v2540_v1 = vld [vmem:[%s262_s28 + $0x4] sm:$0x1]  ;;  %s604_s28 = scalar_lea.vmem (!%p1563_p1), [#allocation2], %s1621_s22 }
  0x29   : > { %v1580_v15 = vcombine.low (!%p1563_p1), %v2538_v0, %v2540_v1 }
  0x2b   : > { %v2156_v2 = vld [vmem:[%s3049_s1] sm:$0xff] (!%p1563_p1)   ;;  %v2157_v4 = vld [vmem:[%s3049_s1 + $0x8] sm:$0xff] (!%p1563_p1)   ;;  %v2158_v5 = vld [vmem:[%s3049_s1 + $0x10] sm:$0xff] (!%p1563_p1)   ;;  %v314_v18 = vshll.u32 (!%p1563_p1), %v1580_v15, 16  ;;  %v312_v21 = vshrl.u32 (!%p1563_p1), %v1580_v15, 16  ;;  %v512_v32 = vrot.slane (!%p1563_p1), %v1580_v15, 1 }
  0x2c   : > { %1886 = vmatpush3.bf16.msra.mxu0 (!%p1563_p1), %v2156_v2  ;;  %v2164_v6 = vld [vmem:[%s3049_s1 + $0x40] sm:$0xff] (!%p1563_p1)   ;;  %v2159_v7 = vld [vmem:[%s3049_s1 + $0x18] sm:$0xff] (!%p1563_p1)   ;;  %v2166_v8 = vld [vmem:[%s3049_s1 + $0x48] sm:$0xff] (!%p1563_p1)  }
  0x2d   : > { %1887 = vmatprep.subr.bf16.mxu0 %v2400_v3  ;;  %1866 = vmatpush3.bf16.msra.mxu1 %v2164_v6  ;;  %v2160_v9 = vld [vmem:[%s3049_s1 + $0x20] sm:$0xff]   ;;  %v2168_v10 = vld [vmem:[%s3049_s1 + $0x50] sm:$0xff]   ;;  %v2161_v11 = vld [vmem:[%s3049_s1 + $0x28] sm:$0xff]   ;;  %v316_v22 = vrot.slane %v314_v18, 1 }
  0x2e   : > { %1867 = vmatprep.subr.bf16.mxu1 %v2400_v3  ;;  %v2170_v12 = vld [vmem:[%s3049_s1 + $0x58] sm:$0xff]   ;;  %v2162_v13 = vld [vmem:[%s3049_s1 + $0x30] sm:$0xff]   ;;  %v2172_v14 = vld [vmem:[%s3049_s1 + $0x60] sm:$0xff]  }
  0x2f   : > { %v2163_v16 = vld [vmem:[%s3049_s1 + $0x38] sm:$0xff]   ;;  %v2174_v17 = vld [vmem:[%s3049_s1 + $0x68] sm:$0xff]   ;;  %v2165_v19 = vld [vmem:[%s3049_s1 + $0x80] sm:$0xff]   ;;  %v317_v25 = vor.u32 %v316_v22, %v312_v21 }
  0x30   : > { %1888 = vmatpush3.bf16.msra.mxu0 %v2157_v4  ;;  %v2176_v20 = vld [vmem:[%s3049_s1 + $0x70] sm:$0xff]   ;;  %v2167_v23 = vld [vmem:[%s3049_s1 + $0x88] sm:$0xff]   ;;  %v2178_v24 = vld [vmem:[%s3049_s1 + $0x78] sm:$0xff]  }
  0x31   : > { %1889 = vmatprep.subr.bf16.mxu0 %v2400_v3  ;;  %1868 = vmatpush3.bf16.msra.mxu1 %v2166_v8  ;;  %v2169_v26 = vld [vmem:[%s3049_s1 + $0x90] sm:$0xff]   ;;  %v2171_v27 = vld [vmem:[%s3049_s1 + $0x98] sm:$0xff]   ;;  %v2173_v28 = vld [vmem:[%s3049_s1 + $0xa0] sm:$0xff]  }
  0x32   : > { %1869 = vmatprep.subr.bf16.mxu1 %v2400_v3  ;;  %v2175_v29 = vld [vmem:[%s3049_s1 + $0xa8] sm:$0xff]   ;;  %v2177_v30 = vld [vmem:[%s3049_s1 + $0xb0] sm:$0xff]   ;;  %v2179_v31 = vld [vmem:[%s3049_s1 + $0xb8] sm:$0xff]  }
  0x34   : > { %1890 = vmatpush3.bf16.msra.mxu0 %v2158_v5 }
  0x35   : > { %1891 = vmatprep.subr.bf16.mxu0 %v2400_v3  ;;  %1870 = vmatpush3.bf16.msra.mxu1 %v2168_v10 }
  0x36   : > { %1871 = vmatprep.subr.bf16.mxu1 %v2400_v3 }
  0x38   : > { %1892 = vmatpush3.bf16.msra.mxu0 %v2159_v7 }
  0x39   : > { %1893 = vmatprep.subr.bf16.mxu0 %v2400_v3  ;;  %1872 = vmatpush3.bf16.msra.mxu1 %v2170_v12 }
  0x3a   : > { %1873 = vmatprep.subr.bf16.mxu1 %v2400_v3 }
  0x3c   : > { %1894 = vmatpush3.bf16.msra.mxu0 %v2160_v9 }
  0x3d   : > { %1895 = vmatprep.subr.bf16.mxu0 %v2400_v3  ;;  %1874 = vmatpush3.bf16.msra.mxu1 %v2172_v14 }
  0x3e   : > { %1875 = vmatprep.subr.bf16.mxu1 %v2400_v3 }
  0x40   : > { %1896 = vmatpush3.bf16.msra.mxu0 %v2161_v11 }
  0x41   : > { %1897 = vmatprep.subr.bf16.mxu0 %v2400_v3  ;;  %1876 = vmatpush3.bf16.msra.mxu1 %v2174_v17 }
  0x42   : > { %1877 = vmatprep.subr.bf16.mxu1 %v2400_v3 }
  0x44   : > { %1898 = vmatpush3.bf16.msra.mxu0 %v2162_v13 }
  0x45   : > { %1899 = vmatprep.subr.bf16.mxu0 %v2400_v3  ;;  %1878 = vmatpush3.bf16.msra.mxu1 %v2176_v20 }
  0x46   : > { %1879 = vmatprep.subr.bf16.mxu1 %v2400_v3 }
  0x48   : > { %1900 = vmatpush3.bf16.msra.mxu0 %v2163_v16 }
  0x49   : > { %1905 = vmatprep.subr.bf16.mxu0 %v2400_v3  ;;  %1880 = vmatpush3.bf16.msra.mxu1 %v2178_v24 }
  0x4b   : > { %1902 = vmatmul.mubr.bf16.vlgmr.msra.gmra.mrb[0].mxu0 %v2538_v0 }
  0x4c   : > { %1906 = vmatpush3.bf16.msra.mxu0 %v2165_v19  ;;  %1921 = vmatprep.mubr.msk.bf16.mxu0 %vm2401_vm0, %v2400_v3 }
  0x4d   : > { %1907 = vmatprep.subr.bf16.mxu0 %v2400_v3  ;;  %1882 = vmatmul.mubr.bf16.vlgmr.msra.gmra.mrb[0].mxu1 %v317_v25 }
  0x50   : > { %1908 = vmatpush3.bf16.msra.mxu0 %v2167_v23 }
  0x51   : > { %1909 = vmatprep.subr.bf16.mxu0 %v2400_v3 }
  0x54   : > { %1910 = vmatpush3.bf16.msra.mxu0 %v2169_v26 }
  0x55   : > { %1911 = vmatprep.subr.bf16.mxu0 %v2400_v3 }
  0x58   : > { %1912 = vmatpush3.bf16.msra.mxu0 %v2171_v27 }
  0x59   : > { %1913 = vmatprep.subr.bf16.mxu0 %v2400_v3 }
  0x5c   : > { %1914 = vmatpush3.bf16.msra.mxu0 %v2173_v28 }
  0x5d   : > { %1915 = vmatprep.subr.bf16.mxu0 %v2400_v3 }
  0x60   : > { %1916 = vmatpush3.bf16.msra.mxu0 %v2175_v29 }
  0x61   : > { %1917 = vmatprep.subr.bf16.mxu0 %v2400_v3 }
  0x64   : > { %1918 = vmatpush3.bf16.msra.mxu0 %v2177_v30 }
  0x65   : > { %1919 = vmatprep.subr.bf16.mxu0 %v2400_v3 }
  0x68   : > { %1920 = vmatpush3.bf16.msra.mxu0 %v2179_v31 }
  0x6b   : > { %1922 = vmatmul.mubr.bf16.vlgmr.msra.gmra.mrb[0].mxu0 %v512_v32 }
 0x120   : > { %v401_v33 = vpop.f32.mrb[0].mxu1 }
 0x121   : > { %v1883_v34 = vpop.f32.mrb[1].mxu1 }
 0x122   : > { %v404_v35 = vpop.f32.mrb[2].mxu1 }
 0x123   : > { %v1884_v36 = vpop.f32.mrb[3].mxu1 }
 0x13e   : > { %v596_v37 = vpop.f32.mrb[0].mxu0 }
 0x13f   : > { %v2045_v38 = vadd.f32 %v596_v37, %v401_v33  ;;  %v1923_v39 = vpop.f32.mrb[1].mxu0 }
 0x140   : > { %v599_v40 = vpop.f32.mrb[2].mxu0 }
 0x141   : > { %606 = vst.msk [vmem:[%s604_s28] sm:$0xff] %vm605_vm1, %v2045_v38  ;;  %v1924_v41 = vpop.f32.mrb[3].mxu0 }
 0x142 PF: > { %p607_p2 = scmp.ge.s32.totalorder %s2374_s18, 1  ;;  %p608_p3 = scmp.le.s32.totalorder %s2374_s18, 4 }
 0x144   : > { %p609_p4 = pnand %p608_p3, %p607_p2 }
 0x145   : > { %s3050_s1 = sld [smem:[#allocation16_spill]] (!%p609_p4)  ;;  %v2402_v43 = vmov (!%p609_p4), 0.0   ;;  %vm2403_vm2 = vmmov (!%p609_p4), 0   ;;  %v1656_v53 = vcombine.low (!%p609_p4), %v2538_v0, %v2540_v1  ;;  %s1622_s8 = sadd.s32 (!%p609_p4), 4294967295, %s2374_s18  ;;  %vm949_vm3 = vcmask (!%p609_p4), 130048  }
 0x146   : > { %612 = sbr.rel (%p609_p4) target bundleno = 612 (0x264), region = 36  ;;  %1925 = vmatprep.subr.bf16.mxu0 (!%p609_p4), %v2402_v43  ;;  %1945 = vmatprep.subr.bf16.mxu1 (!%p609_p4), %v2402_v43  ;;  %s1623_s9 = sshll.u32 (!%p609_p4), %s1622_s8, 3 }
 0x147   : > { %1941 = vmatprep.mubr.msk.bf16.mxu0 (!%p609_p4), %vm2403_vm2, %v2402_v43  ;;  %1961 = vmatprep.mubr.msk.bf16.mxu1 (!%p609_p4), %vm2403_vm2, %v2402_v43  ;;  %v659_v56 = vshll.u32 (!%p609_p4), %v1656_v53, 16  ;;  %v657_v59 = vshrl.u32 (!%p609_p4), %v1656_v53, 16  ;;  %v857_v10 = vrot.slane (!%p609_p4), %v1656_v53, 1  ;;  %s615_s6 = scalar_lea.vmem (!%p609_p4), [#allocation2], %s1623_s9 }
 0x148   : > { %v616_v20 = vld [vmem:[%s615_s6] sm:$0xff] (!%p609_p4) }
 0x149   : > { %v661_v60 = vrot.slane (!%p609_p4), %v659_v56, 1 }
 0x14b   : > { %v2180_v42 = vld [vmem:[%s3050_s1 + $0x100] sm:$0xff] (!%p609_p4)   ;;  %v2182_v45 = vld [vmem:[%s3050_s1 + $0x108] sm:$0xff] (!%p609_p4)   ;;  %v2184_v47 = vld [vmem:[%s3050_s1 + $0x110] sm:$0xff] (!%p609_p4)   ;;  %v662_v63 = vor.u32 (!%p609_p4), %v661_v60, %v657_v59 }
 0x14c   : > { %v2181_v44 = vld [vmem:[%s3050_s1 + $0xc0] sm:$0xff] (!%p609_p4)   ;;  %1926 = vmatpush3.bf16.msra.mxu0 (!%p609_p4), %v2180_v42  ;;  %v2183_v46 = vld [vmem:[%s3050_s1 + $0xc8] sm:$0xff] (!%p609_p4)   ;;  %v2185_v48 = vld [vmem:[%s3050_s1 + $0xd0] sm:$0xff] (!%p609_p4)  }
 0x14d   : > { %1946 = vmatpush3.bf16.msra.mxu1 %v2181_v44  ;;  %1927 = vmatprep.subr.bf16.mxu0 %v2402_v43  ;;  %v2186_v49 = vld [vmem:[%s3050_s1 + $0x118] sm:$0xff]   ;;  %v2188_v51 = vld [vmem:[%s3050_s1 + $0x120] sm:$0xff]   ;;  %v2190_v54 = vld [vmem:[%s3050_s1 + $0x128] sm:$0xff]  }
 0x14e   : > { %1947 = vmatprep.subr.bf16.mxu1 %v2402_v43  ;;  %v2187_v50 = vld [vmem:[%s3050_s1 + $0xd8] sm:$0xff]   ;;  %v2189_v52 = vld [vmem:[%s3050_s1 + $0xe0] sm:$0xff]   ;;  %v2191_v55 = vld [vmem:[%s3050_s1 + $0xe8] sm:$0xff]  }
 0x14f   : > { %v2192_v57 = vld [vmem:[%s3050_s1 + $0x130] sm:$0xff]   ;;  %v2194_v61 = vld [vmem:[%s3050_s1 + $0x138] sm:$0xff]   ;;  %v2196_v2 = vld [vmem:[%s3050_s1 + $0x140] sm:$0xff]  }
 0x150   : > { %1928 = vmatpush3.bf16.msra.mxu0 %v2182_v45  ;;  %v2193_v58 = vld [vmem:[%s3050_s1 + $0xf0] sm:$0xff]   ;;  %v2195_v62 = vld [vmem:[%s3050_s1 + $0xf8] sm:$0xff]   ;;  %v2197_v3 = vld [vmem:[%s3050_s1 + $0x148] sm:$0xff]  }
 0x151   : > { %1948 = vmatpush3.bf16.msra.mxu1 %v2183_v46  ;;  %1929 = vmatprep.subr.bf16.mxu0 %v2402_v43  ;;  %v2198_v4 = vld [vmem:[%s3050_s1 + $0x150] sm:$0xff]   ;;  %v2199_v5 = vld [vmem:[%s3050_s1 + $0x158] sm:$0xff]   ;;  %v2200_v6 = vld [vmem:[%s3050_s1 + $0x160] sm:$0xff]  }
 0x152   : > { %1949 = vmatprep.subr.bf16.mxu1 %v2402_v43  ;;  %v2201_v7 = vld [vmem:[%s3050_s1 + $0x168] sm:$0xff]   ;;  %v2202_v8 = vld [vmem:[%s3050_s1 + $0x170] sm:$0xff]   ;;  %v2203_v9 = vld [vmem:[%s3050_s1 + $0x178] sm:$0xff]  }
 0x154   : > { %1930 = vmatpush3.bf16.msra.mxu0 %v2184_v47 }
 0x155   : > { %1950 = vmatpush3.bf16.msra.mxu1 %v2185_v48  ;;  %1931 = vmatprep.subr.bf16.mxu0 %v2402_v43 }
 0x156   : > { %1951 = vmatprep.subr.bf16.mxu1 %v2402_v43 }
 0x158   : > { %1932 = vmatpush3.bf16.msra.mxu0 %v2186_v49 }
 0x159   : > { %1952 = vmatpush3.bf16.msra.mxu1 %v2187_v50  ;;  %1933 = vmatprep.subr.bf16.mxu0 %v2402_v43 }
 0x15a   : > { %1953 = vmatprep.subr.bf16.mxu1 %v2402_v43 }
 0x15c   : > { %1934 = vmatpush3.bf16.msra.mxu0 %v2188_v51 }
 0x15d   : > { %1954 = vmatpush3.bf16.msra.mxu1 %v2189_v52  ;;  %1935 = vmatprep.subr.bf16.mxu0 %v2402_v43 }
 0x15e   : > { %1955 = vmatprep.subr.bf16.mxu1 %v2402_v43 }
 0x160   : > { %1936 = vmatpush3.bf16.msra.mxu0 %v2190_v54 }
 0x161   : > { %1956 = vmatpush3.bf16.msra.mxu1 %v2191_v55  ;;  %1937 = vmatprep.subr.bf16.mxu0 %v2402_v43 }
 0x162   : > { %1957 = vmatprep.subr.bf16.mxu1 %v2402_v43 }
 0x164   : > { %1938 = vmatpush3.bf16.msra.mxu0 %v2192_v57 }
 0x165   : > { %1958 = vmatpush3.bf16.msra.mxu1 %v2193_v58  ;;  %1939 = vmatprep.subr.bf16.mxu0 %v2402_v43 }
 0x166   : > { %1959 = vmatprep.subr.bf16.mxu1 %v2402_v43 }
 0x168   : > { %1940 = vmatpush3.bf16.msra.mxu0 %v2194_v61 }
 0x169   : > { %1960 = vmatpush3.bf16.msra.mxu1 %v2195_v62  ;;  %1965 = vmatprep.subr.bf16.mxu0 %v2402_v43 }
 0x16b   : > { %1942 = vmatmul.mubr.bf16.vlgmr.msra.gmra.mrb[0].mxu0 %v662_v63 }
 0x16c   : > { %1962 = vmatmul.mubr.bf16.vlgmr.msra.gmra.mrb[0].mxu1 %v2538_v0  ;;  %1966 = vmatpush3.bf16.msra.mxu0 %v2196_v2 }
 0x16d   : > { %1967 = vmatprep.subr.bf16.mxu0 %v2402_v43  ;;  %1981 = vmatprep.mubr.msk.bf16.mxu0 %vm2403_vm2, %v2402_v43 }
 0x170   : > { %1968 = vmatpush3.bf16.msra.mxu0 %v2197_v3 }
 0x171   : > { %1969 = vmatprep.subr.bf16.mxu0 %v2402_v43 }
 0x174   : > { %1970 = vmatpush3.bf16.msra.mxu0 %v2198_v4 }
 0x175   : > { %1971 = vmatprep.subr.bf16.mxu0 %v2402_v43 }
 0x178   : > { %1972 = vmatpush3.bf16.msra.mxu0 %v2199_v5 }
 0x179   : > { %1973 = vmatprep.subr.bf16.mxu0 %v2402_v43 }
 0x17c   : > { %1974 = vmatpush3.bf16.msra.mxu0 %v2200_v6 }
 0x17d   : > { %1975 = vmatprep.subr.bf16.mxu0 %v2402_v43 }
 0x180   : > { %1976 = vmatpush3.bf16.msra.mxu0 %v2201_v7 }
 0x181   : > { %1977 = vmatprep.subr.bf16.mxu0 %v2402_v43 }
 0x184   : > { %1978 = vmatpush3.bf16.msra.mxu0 %v2202_v8 }
 0x185   : > { %1979 = vmatprep.subr.bf16.mxu0 %v2402_v43 }
 0x188   : > { %1980 = vmatpush3.bf16.msra.mxu0 %v2203_v9 }
 0x18b   : > { %1982 = vmatmul.mubr.bf16.vlgmr.msra.gmra.mrb[4].mxu0 %v857_v10 }
 0x23e   : > { %v746_v11 = vpop.f32.mrb[0].mxu0 }
 0x23f   : > { %v1943_v12 = vpop.f32.mrb[1].mxu0  ;;  %v834_v13 = vpop.f32.mrb[0].mxu1 }
 0x240   : > { %v835_v14 = vadd.f32 %v834_v13, %v746_v11  ;;  %v749_v15 = vpop.f32.mrb[2].mxu0  ;;  %v1963_v16 = vpop.f32.mrb[1].mxu1 }
 0x241   : > { %v1944_v17 = vpop.f32.mrb[3].mxu0  ;;  %v837_v18 = vpop.f32.mrb[2].mxu1 }
 0x242   : > { %v1964_v19 = vpop.f32.mrb[3].mxu1 }
 0x25e   : > { %v941_v21 = vpop.f32.mrb[4].mxu0 }
 0x25f   : > { %v947_v22 = vadd.f32 %v941_v21, %v835_v14  ;;  %v1983_v23 = vpop.f32.mrb[5].mxu0 }
 0x260   : > { %v944_v24 = vpop.f32.mrb[6].mxu0 }
 0x261   : > { %v948_v25 = vadd.f32 %v947_v22, %v616_v20  ;;  %v1984_v26 = vpop.f32.mrb[7].mxu0 }
 0x263   : > { %950 = vst.msk [vmem:[%s615_s6] sm:$0xff] %vm949_vm3, %v948_v25 }
 0x264 PF: > { %p1697_p5 = scmp.lt.s32.totalorder %s2374_s18, 2 }
 0x265   : > { %s3051_s1 = sld [smem:[#allocation16_spill]] (!%p1697_p5)  ;;  %v2404_v28 = vmov (!%p1697_p5), 0.0   ;;  %vm2405_vm4 = vmmov (!%p1697_p5), 0   ;;  %v1732_v38 = vcombine.low (!%p1697_p5), %v2538_v0, %v2540_v1  ;;  %s1698_s29 = sadd.s32 (!%p1697_p5), 4294967294, %s2374_s18  ;;  %vm1291_vm5 = vcmask (!%p1697_p5), 130048  }
 0x266   : > { %954 = sbr.rel (%p1697_p5) target bundleno = 900 (0x384), region = 40  ;;  %1985 = vmatprep.subr.bf16.mxu0 (!%p1697_p5), %v2404_v28  ;;  %2005 = vmatprep.subr.bf16.mxu1 (!%p1697_p5), %v2404_v28  ;;  %s1699_s13 = sshll.u32 (!%p1697_p5), %s1698_s29, 3 }
 0x267   : > { %2001 = vmatprep.mubr.msk.bf16.mxu0 (!%p1697_p5), %vm2405_vm4, %v2404_v28  ;;  %2021 = vmatprep.mubr.msk.bf16.mxu1 (!%p1697_p5), %vm2405_vm4, %v2404_v28  ;;  %v1001_v41 = vshll.u32 (!%p1697_p5), %v1732_v38, 16  ;;  %v999_v43 = vshrl.u32 (!%p1697_p5), %v1732_v38, 16  ;;  %v1199_v55 = vrot.slane (!%p1697_p5), %v1732_v38, 1  ;;  %s957_s14 = scalar_lea.vmem (!%p1697_p5), [#allocation2], %s1699_s13 }
 0x269   : > { %v1003_v44 = vrot.slane (!%p1697_p5), %v1001_v41, 1 }
 0x26a   : > { %v958_v3 = vld [vmem:[%s957_s14] sm:$0xff] (!%p1697_p5) }
 0x26b   : > { %v2204_v27 = vld [vmem:[%s3051_s1 + $0x1c0] sm:$0xff] (!%p1697_p5)   ;;  %v2206_v30 = vld [vmem:[%s3051_s1 + $0x1c8] sm:$0xff] (!%p1697_p5)   ;;  %v2208_v32 = vld [vmem:[%s3051_s1 + $0x1d0] sm:$0xff] (!%p1697_p5)   ;;  %v1004_v47 = vor.u32 (!%p1697_p5), %v1003_v44, %v999_v43 }
 0x26c   : > { %v2205_v29 = vld [vmem:[%s3051_s1 + $0x180] sm:$0xff] (!%p1697_p5)   ;;  %1986 = vmatpush3.bf16.msra.mxu0 (!%p1697_p5), %v2204_v27  ;;  %v2207_v31 = vld [vmem:[%s3051_s1 + $0x188] sm:$0xff] (!%p1697_p5)   ;;  %v2209_v33 = vld [vmem:[%s3051_s1 + $0x190] sm:$0xff] (!%p1697_p5)  }
 0x26d   : > { %2006 = vmatpush3.bf16.msra.mxu1 %v2205_v29  ;;  %1987 = vmatprep.subr.bf16.mxu0 %v2404_v28  ;;  %v2210_v34 = vld [vmem:[%s3051_s1 + $0x1d8] sm:$0xff]   ;;  %v2212_v36 = vld [vmem:[%s3051_s1 + $0x1e0] sm:$0xff]   ;;  %v2214_v39 = vld [vmem:[%s3051_s1 + $0x1e8] sm:$0xff]  }
 0x26e   : > { %2007 = vmatprep.subr.bf16.mxu1 %v2404_v28  ;;  %v2211_v35 = vld [vmem:[%s3051_s1 + $0x198] sm:$0xff]   ;;  %v2213_v37 = vld [vmem:[%s3051_s1 + $0x1a0] sm:$0xff]   ;;  %v2215_v40 = vld [vmem:[%s3051_s1 + $0x1a8] sm:$0xff]  }
 0x26f   : > { %v2216_v1 = vld [vmem:[%s3051_s1 + $0x1f0] sm:$0xff]   ;;  %v2218_v45 = vld [vmem:[%s3051_s1 + $0x1f8] sm:$0xff]   ;;  %v2220_v48 = vld [vmem:[%s3051_s1 + $0x200] sm:$0xff]  }
 0x270   : > { %1988 = vmatpush3.bf16.msra.mxu0 %v2206_v30  ;;  %v2217_v42 = vld [vmem:[%s3051_s1 + $0x1b0] sm:$0xff]   ;;  %v2219_v46 = vld [vmem:[%s3051_s1 + $0x1b8] sm:$0xff]   ;;  %v2221_v49 = vld [vmem:[%s3051_s1 + $0x208] sm:$0xff]  }
 0x271   : > { %2008 = vmatpush3.bf16.msra.mxu1 %v2207_v31  ;;  %1989 = vmatprep.subr.bf16.mxu0 %v2404_v28  ;;  %v2222_v50 = vld [vmem:[%s3051_s1 + $0x210] sm:$0xff]   ;;  %v2224_v51 = vld [vmem:[%s3051_s1 + $0x220] sm:$0xff]   ;;  %v2225_v52 = vld [vmem:[%s3051_s1 + $0x228] sm:$0xff]  }
 0x272   : > { %2009 = vmatprep.subr.bf16.mxu1 %v2404_v28  ;;  %v2226_v53 = vld [vmem:[%s3051_s1 + $0x230] sm:$0xff]   ;;  %v2227_v54 = vld [vmem:[%s3051_s1 + $0x238] sm:$0xff]  }
 0x274   : > { %1990 = vmatpush3.bf16.msra.mxu0 %v2208_v32 }
 0x275   : > { %2010 = vmatpush3.bf16.msra.mxu1 %v2209_v33  ;;  %1991 = vmatprep.subr.bf16.mxu0 %v2404_v28 }
 0x276   : > { %2011 = vmatprep.subr.bf16.mxu1 %v2404_v28 }
 0x278   : > { %1992 = vmatpush3.bf16.msra.mxu0 %v2210_v34 }
 0x279   : > { %2012 = vmatpush3.bf16.msra.mxu1 %v2211_v35  ;;  %1993 = vmatprep.subr.bf16.mxu0 %v2404_v28 }
 0x27a   : > { %2013 = vmatprep.subr.bf16.mxu1 %v2404_v28 }
 0x27c   : > { %1994 = vmatpush3.bf16.msra.mxu0 %v2212_v36 }
 0x27d   : > { %2014 = vmatpush3.bf16.msra.mxu1 %v2213_v37  ;;  %1995 = vmatprep.subr.bf16.mxu0 %v2404_v28 }
 0x27e   : > { %2015 = vmatprep.subr.bf16.mxu1 %v2404_v28 }
 0x280   : > { %1996 = vmatpush3.bf16.msra.mxu0 %v2214_v39 }
 0x281   : > { %2016 = vmatpush3.bf16.msra.mxu1 %v2215_v40  ;;  %1997 = vmatprep.subr.bf16.mxu0 %v2404_v28 }
 0x282   : > { %2017 = vmatprep.subr.bf16.mxu1 %v2404_v28 }
 0x284   : > { %1998 = vmatpush3.bf16.msra.mxu0 %v2216_v1 }
 0x285   : > { %2018 = vmatpush3.bf16.msra.mxu1 %v2217_v42  ;;  %1999 = vmatprep.subr.bf16.mxu0 %v2404_v28 }
 0x286   : > { %2019 = vmatprep.subr.bf16.mxu1 %v2404_v28 }
 0x288   : > { %2000 = vmatpush3.bf16.msra.mxu0 %v2218_v45 }
 0x289   : > { %2020 = vmatpush3.bf16.msra.mxu1 %v2219_v46  ;;  %2025 = vmatprep.subr.bf16.mxu0 %v2404_v28 }
 0x28b   : > { %2002 = vmatmul.mubr.bf16.vlgmr.msra.gmra.mrb[0].mxu0 %v1004_v47 }
 0x28c   : > { %2022 = vmatmul.mubr.bf16.vlgmr.msra.gmra.mrb[0].mxu1 %v2538_v0  ;;  %2026 = vmatpush3.bf16.msra.mxu0 %v2220_v48  ;;  %v2223_v0 = vld [vmem:[%s3051_s1 + $0x218] sm:$0xff]  }
 0x28d   : > { %2027 = vmatprep.subr.bf16.mxu0 %v2404_v28  ;;  %2041 = vmatprep.mubr.msk.bf16.mxu0 %vm2405_vm4, %v2404_v28 }
 0x290   : > { %2028 = vmatpush3.bf16.msra.mxu0 %v2221_v49 }
 0x291   : > { %2029 = vmatprep.subr.bf16.mxu0 %v2404_v28 }
 0x294   : > { %2030 = vmatpush3.bf16.msra.mxu0 %v2222_v50 }
 0x295   : > { %2031 = vmatprep.subr.bf16.mxu0 %v2404_v28 }
 0x298   : > { %2032 = vmatpush3.bf16.msra.mxu0 %v2223_v0 }
 0x299   : > { %2033 = vmatprep.subr.bf16.mxu0 %v2404_v28 }
 0x29c   : > { %2034 = vmatpush3.bf16.msra.mxu0 %v2224_v51 }
 0x29d   : > { %2035 = vmatprep.subr.bf16.mxu0 %v2404_v28 }
 0x2a0   : > { %2036 = vmatpush3.bf16.msra.mxu0 %v2225_v52 }
 0x2a1   : > { %2037 = vmatprep.subr.bf16.mxu0 %v2404_v28 }
 0x2a4   : > { %2038 = vmatpush3.bf16.msra.mxu0 %v2226_v53 }
 0x2a5   : > { %2039 = vmatprep.subr.bf16.mxu0 %v2404_v28 }
 0x2a8   : > { %2040 = vmatpush3.bf16.msra.mxu0 %v2227_v54 }
 0x2ab   : > { %2042 = vmatmul.mubr.bf16.vlgmr.msra.gmra.mrb[4].mxu0 %v1199_v55 }
 0x35e   : > { %v1088_v56 = vpop.f32.mrb[0].mxu0 }
 0x35f   : > { %v2003_v57 = vpop.f32.mrb[1].mxu0  ;;  %v1176_v58 = vpop.f32.mrb[0].mxu1 }
 0x360   : > { %v1177_v59 = vadd.f32 %v1176_v58, %v1088_v56  ;;  %v1091_v60 = vpop.f32.mrb[2].mxu0  ;;  %v2023_v61 = vpop.f32.mrb[1].mxu1 }
 0x361   : > { %v2004_v62 = vpop.f32.mrb[3].mxu0  ;;  %v1179_v63 = vpop.f32.mrb[2].mxu1 }
 0x362   : > { %v2024_v2 = vpop.f32.mrb[3].mxu1 }
 0x37e   : > { %v1283_v4 = vpop.f32.mrb[4].mxu0 }
 0x37f   : > { %v1289_v5 = vadd.f32 %v1283_v4, %v1177_v59  ;;  %v2043_v6 = vpop.f32.mrb[5].mxu0 }
 0x380   : > { %v1286_v7 = vpop.f32.mrb[6].mxu0 }
 0x381   : > { %v1290_v8 = vadd.f32 %v1289_v5, %v958_v3  ;;  %v2044_v9 = vpop.f32.mrb[7].mxu0 }
 0x383   : > { %1292 = vst.msk [vmem:[%s957_s14] sm:$0xff] %vm1291_vm5, %v1290_v8 }
 0x384 PF: > { %p1773_p8 = scmp.ne.s32.totalorder %s2374_s18, 5 }
 0x385   : > { %vm1305_vm6 = vcmask (!%p1773_p8), 125952   ;;  %vm1310_vm7 = vcmask (!%p1773_p8), 130048   ;;  %vm1324_vm8 = vcmask (!%p1773_p8), 122880  }
 0x386   : > { %1296 = sbr.rel (%p1773_p8) target bundleno = 930 (0x3a2), region = 44 }
 0x38a   : > { %v1297_v10 = vld [vmem:[#allocation2] sm:$0xff] (!%p1773_p8)  ;;  %v1298_v11 = vld [vmem:[#allocation2 + $0x8] sm:$0xff] (!%p1773_p8)  ;;  %v1299_v12 = vld [vmem:[#allocation2 + $0x10] sm:$0xff] (!%p1773_p8) }
 0x38b   : > { %v1301_v13 = vpack.c.bf16 (!%p1773_p8), %v1297_v10, %v1297_v10  ;;  %v1311_v14 = vsel (!%p1773_p8), %vm1310_vm7, %v1297_v10, 0.0  ;;  %v1326_v15 = vmul.f32 (!%p1773_p8), %v1297_v10, %v1297_v10  ;;  %v1302_v16 = vpack.c.bf16 (!%p1773_p8), %v1298_v11, %v1298_v11  ;;  %v1300_v17 = vld [vmem:[#allocation2 + $0x18] sm:$0xff] (!%p1773_p8) }
 0x38c   : > { %v1312_v18 = vsel (!%p1773_p8), %vm1310_vm7, %v1298_v11, 0.0  ;;  %v1327_v19 = vmul.f32 (!%p1773_p8), %v1298_v11, %v1298_v11  ;;  %v1303_v20 = vpack.c.bf16 (!%p1773_p8), %v1299_v12, %v1299_v12  ;;  %v1314_v21 = vsel (!%p1773_p8), %vm1310_vm7, %v1299_v12, 0.0 }
 0x38d   : > { %1306 = vst.msk [vmem:[%s2542_s27] sm:$0xf] %vm1305_vm6, %v1301_v13  ;;  %v1330_v22 = vsel %vm1310_vm7, %v1326_v15, 0.0  ;;  %1307 = vst.msk [vmem:[%s2542_s27 + $0x4] sm:$0xf] %vm1305_vm6, %v1302_v16  ;;  %v1313_v23 = vadd.f32 %v1312_v18, %v1311_v14  ;;  %v1328_v24 = vmul.f32 %v1299_v12, %v1299_v12  ;;  %v1304_v25 = vpack.c.bf16 %v1300_v17, %v1300_v17 }
 0x38e   : > { %v1331_v26 = vsel %vm1310_vm7, %v1327_v19, 0.0  ;;  %1308 = vst.msk [vmem:[%s2542_s27 + $0x8] sm:$0xf] %vm1305_vm6, %v1303_v20  ;;  %v1316_v27 = vsel %vm1310_vm7, %v1300_v17, 0.0  ;;  %v1329_v28 = vmul.f32 %v1300_v17, %v1300_v17 }
 0x38f   : > { %v1332_v29 = vadd.f32 %v1331_v26, %v1330_v22  ;;  %v1315_v30 = vadd.f32 %v1314_v21, %v1313_v23  ;;  %v1333_v31 = vsel %vm1310_vm7, %v1328_v24, 0.0  ;;  %1309 = vst.msk [vmem:[%s2542_s27 + $0xc] sm:$0xf] %vm1305_vm6, %v1304_v25 }
 0x390   : > { %v1335_v32 = vsel %vm1310_vm7, %v1329_v28, 0.0 }
 0x391   : > { %v1334_v33 = vadd.f32 %v1333_v31, %v1332_v29  ;;  %v1317_v34 = vadd.f32 %v1316_v27, %v1315_v30 }
 0x393   : > { %v1318_v35 = vrot.slane %v1317_v34, 4  ;;  %v1336_v36 = vadd.f32 %v1335_v32, %v1334_v33 }
 0x395   : > { %v1319_v37 = vadd.f32 %v1318_v35, %v1317_v34  ;;  %v1337_v38 = vrot.slane %v1336_v36, 4 }
 0x397   : > { %v1320_v39 = vrot.slane %v1319_v37, 2  ;;  %v1338_v40 = vadd.f32 %v1337_v38, %v1336_v36 }
 0x399   : > { %v1321_v41 = vadd.f32 %v1320_v39, %v1319_v37  ;;  %v1339_v1 = vrot.slane %v1338_v40, 2 }
 0x39b   : > { %v1322_v42 = vrot.slane %v1321_v41, 1  ;;  %v1340_v43 = vadd.f32 %v1339_v1, %v1338_v40 }
 0x39d   : > { %v1323_v44 = vadd.f32 %v1322_v42, %v1321_v41  ;;  %v1341_v45 = vrot.slane %v1340_v43, 1 }
 0x39f   : > { %1325 = vst.msk [vmem:[%s245_s23] sm:$0x1] %vm1324_vm8, %v1323_v44  ;;  %v1342_v46 = vadd.f32 %v1341_v45, %v1340_v43 }
 0x3a1   : > { %1343 = vst.msk [vmem:[%s3038_s12] sm:$0x1] %vm1324_vm8, %v1342_v46 }
 0x3a2 PF: > { %s3052_s18 = sadd.s32 4294967295, %s2398_s24   ;;  %s1778_s8 = sshll.u32 %s2382_s20, 1 }
 0x3a3   : > { %s2891_s7 = sand.u32 1, %s3052_s18   ;;  %s2895_s9 = sadd.s32 %s2378_s19, %s1778_s8 }
 0x3a4   : > { %s1779_s6 = sshll.u32 %s2895_s9, 4  ;;  %s1386_s25 = sshll.u32 %s245_s23, 4  ;;  %s1387_s25 = int_to_ptr.vmem [resolvable:$true] %s1386_s25 }
 0x3a5   : > { %s2905_s28 = scalar_lea.hbm %s3029_s3, %s1779_s6  ;;  %s1350_s29 = scalar_lea.sflag [#allocation6], %s2891_s7 }
 0x3a6   : > { %s2228_s13 = scalar_lea.vmem %s1387_s25, 16  ;;  %s2406_s14 = smov [#allocation5]  }
 0x3a7   : > { %p2229_p9 = scmp.ne.s32.totalorder %s1387_s25, %s2228_s13  ;;  %s2232_s18 = sshll.u32 %s2406_s14, 4  ;;  %s2233_s18 = int_to_ptr.vmem [resolvable:$false] %s2232_s18 }
 0x3a8   : > { %s2234_s8 = scalar_lea.vmem %s2233_s18, 32  ;;  %p2235_p12 = scmp.lt.s32.totalorder %s1387_s25, %s2233_s18 }
 0x3a9   : > { %p2230_p10 = pnand %p2229_p9, %p2502_p6  ;;  %p2236_p13 = scmp.lt.s32.totalorder %s2234_s8, %s2228_s13 }
 0x3ab   : > { %p2231_p11 = pneg %p2230_p10  ;;  %p2237_p0 = por %p2236_p13, %p2235_p12 }
 0x3ad   : > { %p2238_p1 = pnand %p2237_p0, %p2231_p11 }
 0x3af   : > { %2241 = shalt.err (!%p2238_p1)
}
 0x3b0   : > { %s2242_s23 = scalar_lea.hbm %s2905_s28, 16  ;;  %s2246_s14 = scalar_lea.hbm %s3029_s3, 64 }
 0x3b1   : > { %p2243_p2 = scmp.ne.s32.totalorder %s2905_s28, %s2242_s23  ;;  %p2247_p5 = scmp.lt.u32.totalorder %s2905_s28, %s3029_s3 }
 0x3b2   : > { %p2248_p8 = scmp.lt.u32.totalorder %s2246_s14, %s2242_s23  ;;  %p2250_p10 = scmp.lt.u32.totalorder %s2242_s23, %s2905_s28 }
 0x3b3   : > { %p2244_p3 = pnand %p2243_p2, %p2502_p6 }
 0x3b4   : > { %p2249_p9 = por %p2248_p8, %p2247_p5 }
 0x3b5   : > { %p2245_p4 = pneg %p2244_p3 }
 0x3b6   : > { %p2251_p11 = por %p2250_p10, %p2249_p9 }
 0x3b8   : > { %p2252_p12 = pnand %p2251_p11, %p2245_p4 }
 0x3ba   : > { %2255 = shalt.err (!%p2252_p12)
}
 0x3bb   : > { %2052 = dma.vmem_to_hbm [thread:$0]  (%p2502_p6), %s1387_s25, 16, %s2905_s28, %s1350_s29  }
 0x3bc   : > { %s1776_s12 = sshll.u32 %s2382_s20, 3  ;;  %s3053_s13 = sshll.u32 %s2378_s19, 2 }
 0x3bd   : > { %s1365_s8 = sadd.s32 %s1776_s12, %s3053_s13  ;;  %s1368_s26 = sshll.u32 %s2542_s27, 4  ;;  %s2931_s26 = int_to_ptr.vmem [resolvable:$true] %s1368_s26 }
 0x3be   : > { %s1777_s23 = sshll.u32 %s1365_s8, 6  ;;  %s2943_s25 = scalar_lea.hbm %s3030_s4, %s1779_s6 }
 0x3bf   : > { %s2936_s18 = scalar_lea.hbm %s3028_s2, %s1777_s23  ;;  %s1345_s19 = scalar_lea.sflag [#allocation4], %s2526_s11 }
 0x3c0   : > { %s2256_s20 = scalar_lea.vmem %s2931_s26, 256  ;;  %s2407_s27 = smov [#allocation3]  }
 0x3c1   : > { %p2257_p13 = scmp.ne.s32.totalorder %s2931_s26, %s2256_s20  ;;  %s2260_s28 = sshll.u32 %s2407_s27, 4  ;;  %s2261_s28 = int_to_ptr.vmem [resolvable:$false] %s2260_s28 }
 0x3c2   : > { %s2262_s12 = scalar_lea.vmem %s2261_s28, 512  ;;  %p2263_p2 = scmp.lt.s32.totalorder %s2931_s26, %s2261_s28 }
 0x3c3   : > { %p2258_p0 = pnand %p2257_p13, %p2502_p6  ;;  %p2264_p3 = scmp.lt.s32.totalorder %s2262_s12, %s2256_s20 }
 0x3c5   : > { %p2259_p1 = pneg %p2258_p0  ;;  %p2265_p4 = por %p2264_p3, %p2263_p2 }
 0x3c7   : > { %p2266_p5 = pnand %p2265_p4, %p2259_p1 }
 0x3c9   : > { %2269 = shalt.err (!%p2266_p5)
}
 0x3ca   : > { %s2270_s0 = scalar_lea.hbm %s2936_s18, 256  ;;  %s2274_s6 = scalar_lea.hbm %s3028_s2, 1024 }
 0x3cb   : > { %p2271_p8 = scmp.ne.s32.totalorder %s2936_s18, %s2270_s0  ;;  %p2275_p11 = scmp.lt.u32.totalorder %s2936_s18, %s3028_s2 }
 0x3cc   : > { %p2276_p12 = scmp.lt.u32.totalorder %s2274_s6, %s2270_s0  ;;  %p2278_p0 = scmp.lt.u32.totalorder %s2270_s0, %s2936_s18 }
 0x3cd   : > { %p2272_p9 = pnand %p2271_p8, %p2502_p6 }
 0x3ce   : > { %p2277_p13 = por %p2276_p12, %p2275_p11 }
 0x3cf   : > { %p2273_p10 = pneg %p2272_p9 }
 0x3d0   : > { %p2279_p1 = por %p2278_p0, %p2277_p13 }
 0x3d2   : > { %p2280_p2 = pnand %p2279_p1, %p2273_p10 }
 0x3d4   : > { %2283 = shalt.err (!%p2280_p2)
}
 0x3d5   : > { %s2408_s23 = smov 64   ;;  %s2409_s22 = smov 4  }
 0x3d6   : > { %2051 = dma.vmem_to_hbm [thread:$0]  (%p2502_p6), %s2931_s26, 256, %s2936_s18, %s1345_s19, %s2408_s23, %s2408_s23, %s2409_s22  }
 0x3d7   : > { %s3054_s14 = scalar_lea.vmem [#allocation7], %s2526_s11  ;;  %s2410_s28 = smov [#allocation7]  }
 0x3d8   : > { %s1401_s20 = sshll.u32 %s3054_s14, 4  ;;  %s2288_s12 = sshll.u32 %s2410_s28, 4  ;;  %s1402_s20 = int_to_ptr.vmem [resolvable:$true] %s1401_s20  ;;  %s2289_s12 = int_to_ptr.vmem [resolvable:$false] %s2288_s12 }
 0x3d9   : > { %s2284_s27 = scalar_lea.vmem %s1402_s20, 16  ;;  %s2290_s0 = scalar_lea.vmem %s2289_s12, 32 }
 0x3da   : > { %p2285_p3 = scmp.ne.s32.totalorder %s1402_s20, %s2284_s27  ;;  %p2291_p8 = scmp.lt.s32.totalorder %s1402_s20, %s2289_s12 }
 0x3db   : > { %p2292_p9 = scmp.lt.s32.totalorder %s2290_s0, %s2284_s27 }
 0x3dc   : > { %p2286_p4 = pnand %p2285_p3, %p2502_p6 }
 0x3dd   : > { %p2293_p10 = por %p2292_p9, %p2291_p8 }
 0x3de   : > { %p2287_p5 = pneg %p2286_p4 }
 0x3e0   : > { %p2294_p11 = pnand %p2293_p10, %p2287_p5 }
 0x3e2   : > { %2297 = shalt.err (!%p2294_p11)
}
 0x3e3   : > { %s2298_s11 = scalar_lea.hbm %s2943_s25, 16  ;;  %s2302_s19 = scalar_lea.hbm %s3030_s4, 64 }
 0x3e4   : > { %p2299_p12 = scmp.ne.s32.totalorder %s2943_s25, %s2298_s11  ;;  %p2303_p1 = scmp.lt.u32.totalorder %s2943_s25, %s3030_s4 }
 0x3e5   : > { %p2304_p2 = scmp.lt.u32.totalorder %s2302_s19, %s2298_s11  ;;  %p2306_p4 = scmp.lt.u32.totalorder %s2298_s11, %s2943_s25 }
 0x3e6   : > { %p2300_p13 = pnand %p2299_p12, %p2502_p6 }
 0x3e7   : > { %p2305_p3 = por %p2304_p2, %p2303_p1 }
 0x3e8   : > { %p2301_p0 = pneg %p2300_p13 }
 0x3e9   : > { %p2307_p5 = por %p2306_p4, %p2305_p3 }
 0x3eb   : > { %p2308_p8 = pnand %p2307_p5, %p2301_p0 }
 0x3ed   : > { %2311 = shalt.err (!%p2308_p8)
}
 0x3ee   : > { %2053 = dma.vmem_to_hbm [thread:$0]  (%p2502_p6), %s1402_s20, 16, %s2943_s25, %s1350_s29  }
 0x3ef PF: > { %p2067_p9 = scmp.ge.s32.totalorder %s2398_s24, 2  ;;  %s1413_s6 = sand.u32 1, %s2362_s15  }
 0x3f0   : > { %s1414_s13 = scalar_lea.sflag [#allocation4], %s1413_s6 }
 0x3f1   : > { %p2058_p10 = pnand %p2067_p9, %p2509_p7 }
 0x3f3   : > { %2353 = dma.done.wait (!%p2058_p10), %s1414_s13, 256  }
 0x3f4   : > { %2355 = vsyncadd (!%p2058_p10), %s1414_s13, 4294967040  ;;  %s3055_s8 = sadd.s32 4294967294, %s2398_s24  }
 0x3f5   : > { %s1422_s23 = sand.u32 1, %s3055_s8  }
 0x3f6   : > { %s1423_s22 = scalar_lea.sflag [#allocation6], %s1422_s23 }
 0x3f7   : > { %2357 = dma.done.wait (!%p2058_p10), %s1423_s22, 32  }
 0x3f8   : > { %2359 = vsyncadd (!%p2058_p10), %s1423_s22, 4294967264  ;;  %s21_s24 = sadd.s32 1, %s2398_s24   ;;  %s3056_s19 = sld [smem:[#allocation10_spill]] }
 0x3f9   : > { %p18_p6 = scmp.ge.s32.totalorder %s21_s24, 26   ;;  %s3057_s20 = sld [smem:[#allocation11_spill]] }
 0x3fa   : > { %s3058_s30 = sld [smem:[#allocation12_spill]]  ;;  %s3059_s22 = sld [smem:[#allocation13_spill]] }
 0x3fb   : > { %s3060_s23 = sld [smem:[#allocation14_spill]]  ;;  %s3061_s15 = smov %s2366_s16 }
 0x3fc   : > { %s3062_s16 = smov %s2370_s17  ;;  %s3063_s17 = smov %s2523_s10 }
 0x3fd   : > { %s3064_s18 = smov %s2386_s21  ;;  %20 = sbr.rel (!%p18_p6) target bundleno = 11 (0xb), region = 122 }
 0x400   : > { %s3065_s21 = smov %s3058_s30 }
 0x404   :  { %1435 = vsyncpa [#allocation4], 1 }
 0x405   :  { %1437 = vsyncpa [#allocation4 + $0x1], 1 }
 0x406   :  { %1438 = vsyncpa [#allocation6], 1 }
 0x407   :  { %1440 = vsyncpa [#allocation6 + $0x1], 1 }

</bundles_post_ra>
